<compile_context>
chip_gen: v7x
topology: tpu7x:2x2x1
jax: 0.10.0
libtpu: 0.0.40
codegen_flags: <defaults>
</compile_context>

<pallas_src>
import functools

import jax
import jax.numpy as jnp
from jax import lax
from jax.experimental import pallas as pl
from jax.experimental.pallas import tpu as pltpu


def _lms_kernel(lab_ref, x_ref, sum_ref, cnt_ref, *, lam, coeff, ignore_index, hw):
    i = pl.program_id(1)  # tile index along the flattened H*W axis

    @pl.when(i == 0)
    def _():
        sum_ref[...] = jnp.zeros_like(sum_ref)
        cnt_ref[...] = jnp.zeros_like(cnt_ref)

    lg = x_ref[...].astype(jnp.float32)          # (1, C, TM)  (bf16/f32 input ok)
    lab = lab_ref[...]                           # (1, 1, TM) int32
    _, c, tm = lg.shape

    # Mask for the ragged last tile (no HBM padding) + ignore_index pixels.
    col = lax.broadcasted_iota(jnp.int32, (1, 1, tm), 2) + i * tm
    in_bounds = col < hw                                          # (1, 1, TM)
    valid = in_bounds & (lab != ignore_index)                     # (1, 1, TM)
    lb = jnp.where(valid, lab, 0)                                 # clamp to class 0

    # Out-of-bounds lanes may hold garbage from the boundary DMA; keep them finite.
    lg = jnp.where(in_bounds, lg, 0.0)

    cls_idx = lax.broadcasted_iota(jnp.int32, (1, c, tm), 1)
    onehot = cls_idx == lb                                        # (1, C, TM) bool

    # ---- cross entropy on original logits (labels clamped to 0) ----
    m = jnp.max(lg, axis=1, keepdims=True)
    sexp = jnp.sum(jnp.exp(lg - m), axis=1, keepdims=True)
    lse = jnp.log(sexp) + m                                       # (1, 1, TM)
    lg_tgt = jnp.sum(jnp.where(onehot, lg, 0.0), axis=1, keepdims=True)
    ce = lse - lg_tgt                                             # (1, 1, TM)

    # ---- large-margin term: softmax over logits with target slot = -1000 ----
    # Separate max (m2) kept on purpose: it is the numerically safe form.
    lgts = jnp.where(onehot, -1000.0, lg)
    m2 = jnp.max(lgts, axis=1, keepdims=True)
    z2 = lgts - m2
    e = jnp.exp(z2)
    s = jnp.sum(e, axis=1, keepdims=True)
    q = e * pl.reciprocal(s, approx=True)                         # EUP recip
    log_q = z2 - jnp.log(s)
    losses = jnp.where(onehot, 0.0, (q - coeff) * log_q * (lam * 0.5))
    margin = jnp.sum(losses, axis=1, keepdims=True)               # (1, 1, TM)

    validf = valid.astype(jnp.float32)
    # Lane-partial accumulation in the resident output block; final cross-lane
    # reduce happens in the wrapper on a tiny (N, tile_m) array.
    sum_ref[...] += (margin + ce) * validf
    cnt_ref[...] += validf


def _round_up(x, m):
    return ((x + m - 1) // m) * m


def large_margin_softmax_v2(logits, labels, *, lam=0.3, reduction="mean",
                            ignore_index=-1, tile_m=1024):
    """logits: (N, C, H, W) float/bf16; labels: (N, H, W) int. Returns scalar loss."""
    n, c, h, w = logits.shape
    if c < 2:
        raise ValueError("LargeMarginSoftmaxV2 needs at least 2 classes (coeff = 1/(C-1)).")
    hw = h * w

    # Free reshapes, native dtype kept in HBM (kernel upcasts in-register).
    lg = logits.reshape(n, c, hw)
    lb = labels.astype(jnp.int32).reshape(n, 1, hw)

    # Tile sizing: big lane tiles for DMA efficiency, clamped to a VMEM budget
    # that is safe on v5e/v6e/v7x (double-buffered inputs + resident outputs
    # + in-kernel f32 temporaries).
    itemsize = jnp.dtype(logits.dtype).itemsize
    tm = min(_round_up(int(tile_m), 128), _round_up(hw, 128))

    def working_set_bytes(t):
        in_bufs = 2 * (c * t * itemsize + t * 4)   # double-buffered logits + labels
        out_bufs = 2 * (2 * t * 4)                 # resident sum/cnt blocks
        temps = 8 * c * t * 4                      # f32 temporaries inside the kernel
        return in_bufs + out_bufs + temps

    while tm > 512 and working_set_bytes(tm) > 20 * 1024 * 1024:
        tm = _round_up(tm // 2, 128)

    n_tiles = pl.cdiv(hw, tm)

    kernel = functools.partial(
        _lms_kernel,
        lam=float(lam),
        coeff=1.0 / (c - 1.0),
        ignore_index=int(ignore_index),
        hw=hw,
    )

    sum_out, cnt_out = pl.pallas_call(
        kernel,
        out_shape=(jax.ShapeDtypeStruct((n, 1, tm), jnp.float32),
                   jax.ShapeDtypeStruct((n, 1, tm), jnp.float32)),
        grid_spec=pltpu.PrefetchScalarGridSpec(
            num_scalar_prefetch=0,
            grid=(n, n_tiles),
            in_specs=[pl.BlockSpec((1, 1, tm), lambda b, i: (b, 0, i)),
                      pl.BlockSpec((1, c, tm), lambda b, i: (b, 0, i))],
            out_specs=(pl.BlockSpec((1, 1, tm), lambda b, i: (b, 0, 0)),
                       pl.BlockSpec((1, 1, tm), lambda b, i: (b, 0, 0)))),
        compiler_params=pltpu.CompilerParams(
            # Batch axis "parallel" -> megacore split on v7x; tile axis is the
            # accumulation axis (output resident across it) -> "arbitrary".
            dimension_semantics=("parallel", "arbitrary"),
            vmem_limit_bytes=32 * 1024 * 1024),
    )(lb, lg)

    total = jnp.sum(sum_out)
    count = jnp.sum(cnt_out)   # NOTE: all-ignored input -> count==0 -> NaN (matches reference)
    if reduction == "mean":
        return total / count
    elif reduction == "sum":
        return total
    else:
        # TODO(synk): reduction='none' returns a dynamically-shaped masked vector
        # in PyTorch; not representable as a static-shaped kernel output.
        raise NotImplementedError("only 'mean' and 'sum' reductions supported")


def _reference(logits, labels, *, lam=0.3, ignore_index=-1):
    """Pure-JAX reference mirroring LargeMarginSoftmaxFuncV2.forward + mean."""
    logits = logits.astype(jnp.float32)
    n, c, h, w = logits.shape
    coeff = 1.0 / (c - 1.0)
    lab = labels.reshape(-1)
    lg = jnp.transpose(logits, (0, 2, 3, 1)).reshape(-1, c)
    valid = lab != ignore_index
    lb = jnp.where(valid, lab, 0)
    onehot = jnp.arange(c)[None, :] == lb[:, None]
    ce = -jnp.take_along_axis(jax.nn.log_softmax(lg, axis=1),
                              lb[:, None], axis=1)[:, 0]
    lgts = jnp.where(onehot, -1000.0, lg)
    q = jax.nn.softmax(lgts, axis=1)
    log_q = jax.nn.log_softmax(lgts, axis=1)
    losses = (q - coeff) * log_q * (lam / 2.0)
    losses = jnp.where(onehot, 0.0, losses)
    per = losses.sum(axis=1) + ce
    per = jnp.where(valid, per, 0.0)
    return per.sum() / valid.sum()


if __name__ == "__main__":
    key = jax.random.PRNGKey(0)
    k1, k2, k3 = jax.random.split(key, 3)

    N, C, H, W = 2, 4, 16, 16
    logits = jax.random.normal(k1, (N, C, H, W), dtype=jnp.float32)
    labels = jax.random.randint(k2, (N, H, W), 0, C, dtype=jnp.int32)
    # Sprinkle some ignore_index pixels.
    ignore_mask = jax.random.uniform(k3, (N, H, W)) < 0.1
    labels = jnp.where(ignore_mask, -1, labels)

    loss = large_margin_softmax_v2(logits, labels, lam=0.3,
                                   reduction="mean", ignore_index=-1)
    loss = jax.block_until_ready(loss)

    ref = jax.block_until_ready(_reference(logits, labels, lam=0.3,
                                           ignore_index=-1))
    # rtol loosened slightly vs exact math because q uses the EUP approximate
    # reciprocal (pl.reciprocal(approx=True)); everything else is exact f32.
    assert jnp.allclose(loss, ref, rtol=1e-3, atol=1e-5), (loss, ref)

    print("KERNEL_OK")
</pallas_src>

<mosaic_0001>
module attributes {stable_mosaic.version = 11 : i64} {
  func.func @_lms_kernel(%arg0: i32, %arg1: i32, %arg2: memref<1x1x256xi32, #tpu.memory_space<vmem>>, %arg3: memref<1x4x256xf32, #tpu.memory_space<vmem>>, %arg4: memref<1x1x256xf32, #tpu.memory_space<vmem>>, %arg5: memref<1x1x256xf32, #tpu.memory_space<vmem>>) attributes {dimension_semantics = [#tpu.dimension_semantics<parallel>, #tpu.dimension_semantics<arbitrary>], iteration_bounds = array<i64: 2, 1>, scalar_prefetch = 0 : i64, scratch_operands = 0 : i64, tpu.core_type = #tpu.core_type<tc>, window_params = [{transform_indices = @transform_0, window_bounds = array<i64: 1, 1, 256>}, {transform_indices = @transform_1, window_bounds = array<i64: 1, 4, 256>}, {transform_indices = @transform_2, window_bounds = array<i64: 1, 1, 256>}, {transform_indices = @transform_3, window_bounds = array<i64: 1, 1, 256>}]} {
    %c0_i32 = arith.constant 0 : i32
    %0 = arith.cmpi eq, %arg1, %c0_i32 : i32
    %1 = arith.extui %0 : i1 to i32
    %c0_i32_0 = arith.constant 0 : i32
    %2 = arith.cmpi ne, %1, %c0_i32_0 : i32
    scf.if %2 {
      %cst_31 = arith.constant 0.000000e+00 : f32
      %71 = vector.broadcast %cst_31 : f32 to vector<1x1x256xf32>
      %c0_32 = arith.constant 0 : index
      %c0_33 = arith.constant 0 : index
      %c0_34 = arith.constant 0 : index
      %72 = vector.load %arg4[%c0_32, %c0_33, %c0_34] : memref<1x1x256xf32, #tpu.memory_space<vmem>>, vector<1x1x256xf32>
      tpu.vector_store %arg4[%c0_32, %c0_33, %c0_34], %71 {strides = array<i32>} : memref<1x1x256xf32, #tpu.memory_space<vmem>>, vector<1x1x256xf32>,
      %cst_35 = arith.constant 0.000000e+00 : f32
      %73 = vector.broadcast %cst_35 : f32 to vector<1x1x256xf32>
      %c0_36 = arith.constant 0 : index
      %c0_37 = arith.constant 0 : index
      %c0_38 = arith.constant 0 : index
      %74 = vector.load %arg5[%c0_36, %c0_37, %c0_38] : memref<1x1x256xf32, #tpu.memory_space<vmem>>, vector<1x1x256xf32>
      tpu.vector_store %arg5[%c0_36, %c0_37, %c0_38], %73 {strides = array<i32>} : memref<1x1x256xf32, #tpu.memory_space<vmem>>, vector<1x1x256xf32>,
    } else {
    }
    %c0 = arith.constant 0 : index
    %c0_1 = arith.constant 0 : index
    %c0_2 = arith.constant 0 : index
    %3 = vector.load %arg3[%c0, %c0_1, %c0_2] : memref<1x4x256xf32, #tpu.memory_space<vmem>>, vector<1x4x256xf32>
    %c0_3 = arith.constant 0 : index
    %c0_4 = arith.constant 0 : index
    %c0_5 = arith.constant 0 : index
    %4 = vector.load %arg2[%c0_3, %c0_4, %c0_5] : memref<1x1x256xi32, #tpu.memory_space<vmem>>, vector<1x1x256xi32>
    %5 = tpu.iota {dimensions = array<i32: 2>} : vector<1x1x256xi32>
    %c256_i32 = arith.constant 256 : i32
    %6 = arith.muli %arg1, %c256_i32 : i32
    %7 = vector.broadcast %6 : i32 to vector<1x1x256xi32>
    %8 = arith.addi %5, %7 : vector<1x1x256xi32>
    %c256_i32_6 = arith.constant 256 : i32
    %9 = vector.broadcast %c256_i32_6 : i32 to vector<1x1x256xi32>
    %10 = arith.cmpi slt, %8, %9 : vector<1x1x256xi32>
    %c-1_i32 = arith.constant -1 : i32
    %11 = vector.broadcast %c-1_i32 : i32 to vector<1x1x256xi32>
    %12 = arith.cmpi ne, %4, %11 : vector<1x1x256xi32>
    %13 = arith.andi %10, %12 : vector<1x1x256xi1>
    %c0_i32_7 = arith.constant 0 : i32
    %14 = vector.broadcast %c0_i32_7 : i32 to vector<1x1x256xi32>
    %15 = arith.select %13, %4, %14 : vector<1x1x256xi1>, vector<1x1x256xi32>
    %cst = arith.constant 0.000000e+00 : f32
    %16 = vector.shape_cast %10 : vector<1x1x256xi1> to vector<1x1x256xi1>
    %17 = vector.broadcast %16 : vector<1x1x256xi1> to vector<1x4x256xi1>
    %18 = vector.broadcast %cst : f32 to vector<1x4x256xf32>
    %19 = arith.select %17, %3, %18 : vector<1x4x256xi1>, vector<1x4x256xf32>
    %20 = tpu.iota {dimensions = array<i32: 1>} : vector<1x4x256xi32>
    %21 = vector.broadcast %15 : vector<1x1x256xi32> to vector<1x4x256xi32>
    %22 = arith.cmpi eq, %20, %21 : vector<1x4x256xi32>
    %cst_8 = arith.constant dense<0xFF800000> : vector<1x256xf32>
    %23 = vector.multi_reduction <maximumf>, %19, %cst_8 [1] : vector<1x4x256xf32> to vector<1x256xf32>
    %24 = vector.shape_cast %23 : vector<1x256xf32> to vector<1x1x256xf32>
    %25 = vector.broadcast %24 : vector<1x1x256xf32> to vector<1x4x256xf32>
    %26 = arith.subf %19, %25 : vector<1x4x256xf32>
    %27 = math.exp %26 : vector<1x4x256xf32>
    %cst_9 = arith.constant dense<0.000000e+00> : vector<1x256xf32>
    %28 = vector.multi_reduction <add>, %27, %cst_9 [1] : vector<1x4x256xf32> to vector<1x256xf32>
    %29 = vector.shape_cast %28 : vector<1x256xf32> to vector<1x1x256xf32>
    %30 = math.log %29 : vector<1x1x256xf32>
    %31 = arith.addf %30, %24 : vector<1x1x256xf32>
    %cst_10 = arith.constant 0.000000e+00 : f32
    %32 = vector.broadcast %cst_10 : f32 to vector<1x4x256xf32>
    %33 = arith.select %22, %19, %32 : vector<1x4x256xi1>, vector<1x4x256xf32>
    %cst_11 = arith.constant dense<0.000000e+00> : vector<1x256xf32>
    %34 = vector.multi_reduction <add>, %33, %cst_11 [1] : vector<1x4x256xf32> to vector<1x256xf32>
    %35 = vector.shape_cast %34 : vector<1x256xf32> to vector<1x1x256xf32>
    %36 = arith.subf %31, %35 : vector<1x1x256xf32>
    %cst_12 = arith.constant -1.000000e+03 : f32
    %37 = vector.broadcast %cst_12 : f32 to vector<1x4x256xf32>
    %38 = arith.select %22, %37, %19 : vector<1x4x256xi1>, vector<1x4x256xf32>
    %cst_13 = arith.constant dense<0xFF800000> : vector<1x256xf32>
    %39 = vector.multi_reduction <maximumf>, %38, %cst_13 [1] : vector<1x4x256xf32> to vector<1x256xf32>
    %40 = vector.shape_cast %39 : vector<1x256xf32> to vector<1x1x256xf32>
    %41 = vector.broadcast %40 : vector<1x1x256xf32> to vector<1x4x256xf32>
    %42 = arith.subf %38, %41 : vector<1x4x256xf32>
    %43 = math.exp %42 : vector<1x4x256xf32>
    %cst_14 = arith.constant dense<0.000000e+00> : vector<1x256xf32>
    %44 = vector.multi_reduction <add>, %43, %cst_14 [1] : vector<1x4x256xf32> to vector<1x256xf32>
    %45 = vector.shape_cast %44 : vector<1x256xf32> to vector<1x1x256xf32>
    %46 = tpu.reciprocal %45 {approx = true} : vector<1x1x256xf32> -> vector<1x1x256xf32>
    %47 = vector.broadcast %46 : vector<1x1x256xf32> to vector<1x4x256xf32>
    %48 = arith.mulf %43, %47 : vector<1x4x256xf32>
    %49 = math.log %45 : vector<1x1x256xf32>
    %50 = vector.broadcast %49 : vector<1x1x256xf32> to vector<1x4x256xf32>
    %51 = arith.subf %42, %50 : vector<1x4x256xf32>
    %cst_15 = arith.constant 0.333333343 : f32
    %52 = vector.broadcast %cst_15 : f32 to vector<1x4x256xf32>
    %53 = arith.subf %48, %52 : vector<1x4x256xf32>
    %54 = arith.mulf %53, %51 : vector<1x4x256xf32>
    %cst_16 = arith.constant 1.500000e-01 : f32
    %55 = vector.broadcast %cst_16 : f32 to vector<1x4x256xf32>
    %56 = arith.mulf %54, %55 : vector<1x4x256xf32>
    %cst_17 = arith.constant 0.000000e+00 : f32
    %57 = vector.broadcast %cst_17 : f32 to vector<1x4x256xf32>
    %58 = arith.select %22, %57, %56 : vector<1x4x256xi1>, vector<1x4x256xf32>
    %cst_18 = arith.constant dense<0.000000e+00> : vector<1x256xf32>
    %59 = vector.multi_reduction <add>, %58, %cst_18 [1] : vector<1x4x256xf32> to vector<1x256xf32>
    %60 = vector.shape_cast %59 : vector<1x256xf32> to vector<1x1x256xf32>
    %61 = arith.extui %13 : vector<1x1x256xi1> to vector<1x1x256xi32>
    %62 = arith.sitofp %61 : vector<1x1x256xi32> to vector<1x1x256xf32>
    %c0_19 = arith.constant 0 : index
    %c0_20 = arith.constant 0 : index
    %c0_21 = arith.constant 0 : index
    %63 = vector.load %arg4[%c0_19, %c0_20, %c0_21] : memref<1x1x256xf32, #tpu.memory_space<vmem>>, vector<1x1x256xf32>
    %64 = arith.addf %60, %36 : vector<1x1x256xf32>
    %65 = arith.mulf %64, %62 : vector<1x1x256xf32>
    %66 = arith.addf %63, %65 : vector<1x1x256xf32>
    %c0_22 = arith.constant 0 : index
    %c0_23 = arith.constant 0 : index
    %c0_24 = arith.constant 0 : index
    %67 = vector.load %arg4[%c0_22, %c0_23, %c0_24] : memref<1x1x256xf32, #tpu.memory_space<vmem>>, vector<1x1x256xf32>
    tpu.vector_store %arg4[%c0_22, %c0_23, %c0_24], %66 {strides = array<i32>} : memref<1x1x256xf32, #tpu.memory_space<vmem>>, vector<1x1x256xf32>,
    %c0_25 = arith.constant 0 : index
    %c0_26 = arith.constant 0 : index
    %c0_27 = arith.constant 0 : index
    %68 = vector.load %arg5[%c0_25, %c0_26, %c0_27] : memref<1x1x256xf32, #tpu.memory_space<vmem>>, vector<1x1x256xf32>
    %69 = arith.addf %68, %62 : vector<1x1x256xf32>
    %c0_28 = arith.constant 0 : index
    %c0_29 = arith.constant 0 : index
    %c0_30 = arith.constant 0 : index
    %70 = vector.load %arg5[%c0_28, %c0_29, %c0_30] : memref<1x1x256xf32, #tpu.memory_space<vmem>>, vector<1x1x256xf32>
    tpu.vector_store %arg5[%c0_28, %c0_29, %c0_30], %69 {strides = array<i32>} : memref<1x1x256xf32, #tpu.memory_space<vmem>>, vector<1x1x256xf32>,
    return
  }
  func.func @transform_0(%arg0: i32, %arg1: i32) -> (i32, i32, i32) {
    %c0_i32 = arith.constant 0 : i32
    %c0_i32_0 = arith.constant 0 : i32
    return %arg0, %c0_i32, %arg1 : i32, i32, i32
  }
  func.func @transform_1(%arg0: i32, %arg1: i32) -> (i32, i32, i32) {
    %c0_i32 = arith.constant 0 : i32
    %c0_i32_0 = arith.constant 0 : i32
    return %arg0, %c0_i32, %arg1 : i32, i32, i32
  }
  func.func @transform_2(%arg0: i32, %arg1: i32) -> (i32, i32, i32) {
    %c0_i32 = arith.constant 0 : i32
    %c0_i32_0 = arith.constant 0 : i32
    %c0_i32_1 = arith.constant 0 : i32
    return %arg0, %c0_i32, %c0_i32_0 : i32, i32, i32
  }
  func.func @transform_3(%arg0: i32, %arg1: i32) -> (i32, i32, i32) {
    %c0_i32 = arith.constant 0 : i32
    %c0_i32_0 = arith.constant 0 : i32
    %c0_i32_1 = arith.constant 0 : i32
    return %arg0, %c0_i32, %c0_i32_0 : i32, i32, i32
  }
}

</mosaic_0001>

<bundles_post_ra>
// kernel: tpu_custom_call.1
= control target key start
LH: loop header
LB: loop body
LE: loop exit
PB: predicated region body
PF: predicated region fallthrough
CT: control target
= control target key end

     0   :  { %9 = vsyncpa [#allocation3], 0  ;;  %s1360_s0 = inlined_call_operand.hbm [shape: s32[2,1,256], index: 0, kind: input, shape index: {}]   ;;  %s1361_s1 = inlined_call_operand.hbm [shape: f32[2,4,256], index: 1, kind: input, shape index: {}]   ;;  %s1362_s2 = inlined_call_operand.hbm [shape: f32[2,1,256], index: 2, kind: output, shape index: {0}]   ;;  %s1363_s3 = inlined_call_operand.hbm [shape: f32[2,1,256], index: 3, kind: output, shape index: {1}]  }
   0x1   :  { %11 = vsyncpa [#allocation3 + $0x1], 0 }
   0x2   :  { %12 = vsyncpa [#allocation6], 0 }
   0x3   :  { %14 = vsyncpa [#allocation6 + $0x1], 0 }
   0x4   :  { %15 = vsyncpa [#allocation4], 0 }
   0x5   :  { %17 = vsyncpa [#allocation4 + $0x1], 0 }
   0x6   :  { %18 = vsyncpa [#allocation9], 0 }
   0x7   :  { %20 = vsyncpa [#allocation9 + $0x1], 0  ;;  %s1012_s12 = smov 0   ;;  %s1014_s13 = smov 0  }
   0x8   :  { %s1016_s14 = smov 0   ;;  %s1018_s15 = smov 0  }
   0x9   :  { %s1020_s16 = smov 0   ;;  %s1022_s17 = smov 0  }
   0xa LB: > { %s678_s18 = sadd.s32 4294967295, %s983_s17   ;;  %s679_s19 = sadd.s32 4294967294, %s983_s17   ;;  %s983_s17 = sphi %s1022_s17, %s26_s17   ;;  %s979_s16 = sphi %s1020_s16, %s1389_s16   ;;  %s975_s15 = sphi %s1018_s15, %s1388_s15   ;;  %s971_s14 = sphi %s1016_s14, %s1387_s14   ;;  %s967_s13 = sphi %s1014_s13, %s1386_s13   ;;  %s963_s12 = sphi %s1012_s12, %s1385_s12  }
   0xb   : > { %s38_s20 = sadd.s32 1, %s979_s16  ;;  %s47_s21 = sadd.s32 1, %s971_s14 }
   0xc   : > { %p40_p0 = scmp.ge.s32.totalorder %s38_s20, 2  ;;  %p54_p1 = scmp.ne.s32.totalorder %s971_s14, %s967_s13 }
   0xd   : > { %p55_p2 = scmp.eq.s32.totalorder %s983_s17, 0  ;;  %p60_p3 = scmp.ne.s32.totalorder %s967_s13, %s963_s12 }
   0xe   : > { %s1391_s20 = smov (%p40_p0, %s38_s20), 0  ;;  %p61_p5 = scmp.eq.s32.totalorder %s678_s18, 0 }
   0xf   : > { %p1053_p4 = por %p55_p2, %p54_p1  ;;  %s42_s23 = ssub.s32 %s979_s16, %s1391_s20 }
  0x10   : > { %p112_p6 = scmp.eq.s32.totalorder %s678_s18, 1  ;;  %p45_p7 = scmp.eq.s32.totalorder %s42_s23, 0 }
  0x11   : > { %p1059_p8 = por %p61_p5, %p60_p3  ;;  %p118_p10 = scmp.eq.s32.totalorder %s679_s19, 1 }
  0x12   : > { %p1063_p9 = por %p112_p6, %p54_p1  ;;  %p731_p13 = scmp.lt.s32.totalorder %s983_s17, 2 }
  0x13   : > { %s1367_s24 = scalar_select %p1059_p8, 1, 0 }
  0x14   : > { %s1368_s25 = scalar_select %p1063_p9, 1, 0 }
  0x15   : > { %s1068_s26 = scalar_select %p45_p7, %s971_s14, %s47_s21  }
  0x16   : > { %p1070_p11 = por %p118_p10, %p60_p3  ;;  %s1077_s28 = sand.u32 1, %s971_s14  }
  0x17   : > { %s682_s29 = sshll.u32 %s1077_s28, 1  ;;  %s705_s30 = sshll.u32 %s979_s16, 5 }
  0x18   : > { %s1369_s27 = scalar_select %p1070_p11, 1, 0 }
  0x19   : > { %s1084_s6 = scalar_lea.hbm %s1360_s0, %s705_s30  ;;  %s168_s7 = scalar_lea.vmem [#allocation2], %s682_s29 }
  0x1a   : > { %s178_s8 = sshll.u32 %s168_s7, 4  ;;  %p1090_p0 = pnand %p731_p13, %p1053_p4  ;;  %s1086_s8 = int_to_ptr.vmem [resolvable:$true] %s178_s8 }
  0x1b   : > { %s165_s10 = scalar_lea.sflag [#allocation3], %s1077_s28  ;;  %s805_s11 = scalar_lea.hbm %s1084_s6, 32 }
  0x1c   : > { %p806_p3 = scmp.ne.s32.totalorder %s1084_s6, %s805_s11  ;;  %p807_p5 = pneg %p1090_p0 }
  0x1d   : > { %s810_s21 = scalar_lea.hbm %s1360_s0, 64  ;;  %p811_p4 = scmp.lt.u32.totalorder %s1084_s6, %s1360_s0 }
  0x1e   : > { %p808_p6 = pnand %p807_p5, %p806_p3  ;;  %p812_p10 = scmp.lt.u32.totalorder %s810_s21, %s805_s11 }
  0x1f   : > { %p814_p12 = scmp.lt.u32.totalorder %s805_s11, %s1084_s6 }
  0x20   : > { %p809_p7 = pneg %p808_p6  ;;  %p813_p13 = por %p812_p10, %p811_p4 }
  0x22   : > { %p815_p1 = por %p814_p12, %p813_p13 }
  0x24   : > { %p816_p2 = pnand %p815_p1, %p809_p7 }
  0x26   : > { %819 = shalt.err (!%p816_p2)
}
  0x27   : > { %s820_s29 = scalar_lea.vmem %s1086_s8, 32  ;;  %s985_s30 = smov [#allocation2]  }
  0x28   : > { %p821_p3 = scmp.ne.s32.totalorder %s1086_s8, %s820_s29  ;;  %s825_s4 = sshll.u32 %s985_s30, 4  ;;  %s826_s4 = int_to_ptr.vmem [resolvable:$false] %s825_s4 }
  0x29   : > { %s827_s5 = scalar_lea.vmem %s826_s4, 64  ;;  %p828_p9 = scmp.lt.s32.totalorder %s1086_s8, %s826_s4 }
  0x2a   : > { %p823_p6 = pnand %p821_p3, %p807_p5  ;;  %p829_p4 = scmp.lt.s32.totalorder %s827_s5, %s820_s29 }
  0x2c   : > { %p824_p11 = pneg %p823_p6  ;;  %p830_p10 = por %p829_p4, %p828_p9 }
  0x2e   : > { %p831_p12 = pnand %p830_p10, %p824_p11 }
  0x30   : > { %834 = shalt.err (!%p831_p12)
}
  0x31   : > { %720 = dma.hbm_to_vmem [thread:$0]  (!%p1090_p0), %s1084_s6, 32, %s1086_s8, %s165_s10  }
  0x32   : > { %p1371_p1 = scmp.lt.s32.totalorder %s983_s17, 3  ;;  %p1372_p2 = scmp.ge.s32.totalorder %s983_s17, 1 }
  0x33   : > { %s685_s11 = sshll.u32 %s1077_s28, 3  ;;  %s706_s18 = sshll.u32 %s979_s16, 7 }
  0x34   : > { %p1126_p7 = pnand %p1372_p2, %p1371_p1  ;;  %s1135_s22 = scalar_lea.hbm %s1361_s1, %s706_s18 }
  0x35   : > { %s189_s23 = scalar_lea.vmem [#allocation5], %s685_s11  ;;  %s186_s6 = scalar_lea.sflag [#allocation6], %s1077_s28 }
  0x36   : > { %s1373_s7 = scalar_select %p1126_p7, 1, 0 }
  0x37   : > { %s199_s29 = sshll.u32 %s189_s23, 4  ;;  %s835_s8 = scalar_lea.hbm %s1135_s22, 128  ;;  %s200_s29 = int_to_ptr.vmem [resolvable:$true] %s199_s29 }
  0x38   : > { %p836_p9 = scmp.ne.s32.totalorder %s1135_s22, %s835_s8  ;;  %s840_s4 = scalar_lea.hbm %s1361_s1, 256 }
  0x39   : > { %p841_p3 = scmp.lt.u32.totalorder %s1135_s22, %s1361_s1  ;;  %p842_p6 = scmp.lt.u32.totalorder %s840_s4, %s835_s8 }
  0x3a   : > { %p838_p11 = pnand %p836_p9, %p807_p5  ;;  %p844_p10 = scmp.lt.u32.totalorder %s835_s8, %s1135_s22 }
  0x3b   : > { %p843_p4 = por %p842_p6, %p841_p3 }
  0x3c   : > { %p839_p13 = pneg %p838_p11 }
  0x3d   : > { %p845_p12 = por %p844_p10, %p843_p4 }
  0x3f   : > { %p846_p1 = pnand %p845_p12, %p839_p13 }
  0x41   : > { %849 = shalt.err (!%p846_p1)
}
  0x42   : > { %s850_s28 = scalar_lea.vmem %s200_s29, 128  ;;  %s986_s11 = smov [#allocation5]  }
  0x43   : > { %p851_p2 = scmp.ne.s32.totalorder %s200_s29, %s850_s28  ;;  %s855_s19 = sshll.u32 %s986_s11, 4  ;;  %s856_s19 = int_to_ptr.vmem [resolvable:$false] %s855_s19 }
  0x44   : > { %s857_s21 = scalar_lea.vmem %s856_s19, 256  ;;  %p858_p8 = scmp.lt.s32.totalorder %s200_s29, %s856_s19 }
  0x45   : > { %p853_p9 = pnand %p851_p2, %p807_p5  ;;  %p859_p7 = scmp.lt.s32.totalorder %s857_s21, %s850_s28 }
  0x47   : > { %p854_p11 = pneg %p853_p9  ;;  %p860_p3 = por %p859_p7, %p858_p8 }
  0x49   : > { %p861_p6 = pnand %p860_p3, %p854_p11 }
  0x4b   : > { %864 = shalt.err (!%p861_p6)
}
  0x4c   : > { %723 = dma.hbm_to_vmem [thread:$0]  (!%p1090_p0), %s1135_s22, 128, %s200_s29, %s186_s6  }
  0x4d   : > { %p1374_p13 = scmp.ne.s32.totalorder %s1373_s7, 0 }
  0x4e   : > { %s1160_s23 = sand.u32 (!%p1374_p13), 1, %s967_s13   ;;  %p1375_p5 = scmp.ne.s32.totalorder (!%p1374_p13), %s1367_s24, 0 }
  0x4f   : > { %208 = sbr.rel (%p1374_p13) target bundleno = 218 (0xda), region = 28  ;;  %s689_s8 = sshll.u32 (!%p1374_p13), %s1160_s23, 1 }
  0x50   : > { %s211_s10 = scalar_lea.sflag (!%p1374_p13), [#allocation3], %s1160_s23  ;;  %s214_s30 = scalar_lea.vmem (!%p1374_p13), [#allocation2], %s689_s8 }
  0x56   : > { %946 = dma.done.wait (%p1375_p5), %s211_s10, 32  }
  0x57   : > { %948 = vsyncadd (%p1375_p5), %s211_s10, 4294967264  ;;  %s690_s9 = sshll.u32 %s1160_s23, 3  ;;  %s220_s7 = scalar_lea.sflag [#allocation6], %s1160_s23 }
  0x58   : > { %s223_s22 = scalar_lea.vmem [#allocation5], %s690_s9 }
  0x59   : > { %950 = dma.done.wait (%p1375_p5), %s220_s7, 128  }
  0x5a   : > { %952 = vsyncadd (%p1375_p5), %s220_s7, 4294967168  ;;  %v262_v0 = vlaneseq  ;;  %s1178_s29 = scalar_lea.vmem [#allocation7], %s689_s8  ;;  %v987_v3 = vmov 0.0   ;;  %s1183_s6 = scalar_lea.vmem [#allocation8], %s689_s8  ;;  %v1188_v6 = vld [vmem:[%s223_s22] sm:$0xff]  ;;  %vm324_vm2 = vcmask 1043456  }
  0x5b   : > { %v269_v7 = vld [vmem:[%s214_s30] sm:$0x3]  ;;  %v988_v8 = vmov 1966171168   ;;  %v1192_v10 = vcombine.high %v1188_v6, %v1188_v6  ;;  %v989_v11 = vmov 0   ;;  %v325_v15 = vsel %vm324_vm2, %v1188_v6, -inf }
  0x5c   : > { %vm1174_vm0 = vcmp.lt.s32.totalorder %v262_v0, 256  ;;  %v282_v2 = vshrl.u32 %v262_v0, 7  ;;  %v464_v9 = vunpack.c.l.s4 %v988_v8  ;;  %vm279_vm1 = vcmp.ne.s32.totalorder %v269_v7, 4294967295  ;;  %s707_s24 = sshll.u32 %s975_s15, 5  ;;  %s539_s4 = sshll.u32 %s1183_s6, 4  ;;  %s1242_s4 = int_to_ptr.vmem [resolvable:$true] %s539_s4 }
  0x5d   : > { %266 = vst.msk [vmem:[%s1178_s29] sm:$0x3] %vm1174_vm0, %v987_v3  ;;  %267 = vst.msk [vmem:[%s1183_s6] sm:$0x3] %vm1174_vm0, %v987_v3  ;;  %v280_v12 = vsel %vm279_vm1, 1, %v989_v11  ;;  %v326_v18 = vrot.slane %v325_v15, 4  ;;  %s1240_s28 = scalar_lea.hbm %s1363_s3, %s707_s24 }
  0x5e   : > { %v283_v4 = vsub.s32 0, %v282_v2  ;;  %v287_v5 = vsub.s32 1, %v282_v2  ;;  %v332_v19 = vsel %vm324_vm2, %v1192_v10, -inf  ;;  %v465_v21 = vunpack.c.0.s8 %v464_v9  ;;  %s511_s11 = scalar_lea.sflag [#allocation9], %s1160_s23  ;;  %s865_s19 = scalar_lea.vmem %s1242_s4, 32 }
  0x5f   : > { %v333_v20 = vrot.slane %v332_v19, 4  ;;  %v327_v22 = vmax.f32 %v325_v15, %v326_v18  ;;  %p866_p8 = scmp.ne.s32.totalorder %s1242_s4, %s865_s19  ;;  %p1382_p0 = scmp.ne.s32.totalorder %s1368_s25, 0 }
  0x60   : > { %v296_v13 = vrot.slane %v269_v7, %v283_v4  ;;  %v300_v14 = vrot.slane %v269_v7, %v287_v5  ;;  %v284_v16 = vrot.slane %v280_v12, %v283_v4  ;;  %v288_v17 = vrot.slane %v280_v12, %v287_v5  ;;  %s990_s21 = smov [#allocation8]  }
  0x61   : > { %v334_v25 = vmax.f32 %v332_v19, %v333_v20  ;;  %v328_v28 = vrot.slane %v327_v22, 2  ;;  %v1202_v32 = vsub.s32 %v465_v21, %v282_v2  ;;  %p867_p7 = pnand %p866_p8, %p1382_p0  ;;  %s869_s8 = sshll.u32 %s990_s21, 4  ;;  %s870_s8 = int_to_ptr.vmem [resolvable:$false] %s869_s8 }
  0x62   : > { %vm289_vm3 = vcmp.ne.s32.totalorder %v284_v16, 0  ;;  %vm290_vm4 = vcmp.ne.s32.totalorder %v288_v17, 0  ;;  %s871_s10 = scalar_lea.vmem %s870_s8, 64  ;;  %p872_p10 = scmp.lt.s32.totalorder %s1242_s4, %s870_s8 }
  0x63   : > { %v301_v23 = vsel %vm289_vm3, %v296_v13, 0  ;;  %v302_v24 = vsel %vm290_vm4, %v300_v14, 0  ;;  %v335_v29 = vrot.slane %v334_v25, 2  ;;  %v1198_v30 = vsel %vm289_vm3, 1.0, %v987_v3  ;;  %p868_p4 = pneg %p867_p7  ;;  %p873_p12 = scmp.lt.s32.totalorder %s871_s10, %s865_s19 }
  0x64   : > { %v317_v26 = vrot.slane %v301_v23, %v283_v4  ;;  %v321_v27 = vrot.slane %v302_v24, %v283_v4  ;;  %v1200_v31 = vsel %vm290_vm4, 1.0, %v987_v3  ;;  %v329_v35 = vmax.f32 %v327_v22, %v328_v28  ;;  %v484_v49 = vld [vmem:[%s1183_s6] sm:$0x3] }
  0x65   : > { %v487_v36 = vcombine.low %v1198_v30, %v1200_v31  ;;  %v336_v37 = vmax.f32 %v334_v25, %v335_v29  ;;  %p874_p1 = por %p873_p12, %p872_p10 }
  0x66   : > { %vm1204_vm5 = vcmp.eq.s32.totalorder %v282_v2, %v317_v26  ;;  %vm1208_vm6 = vcmp.eq.s32.totalorder %v282_v2, %v321_v27  ;;  %v330_v39 = vrot.slane %v329_v35, 1 }
  0x67   : > { %v383_v38 = vsel %vm1204_vm5, -1000.0, %v1188_v6  ;;  %v384_v40 = vsel %vm1208_vm6, -1000.0, %v1192_v10  ;;  %v337_v41 = vrot.slane %v336_v37, 1  ;;  %v494_v46 = vrot.slane %v487_v36, %v1202_v32  ;;  %p875_p2 = pnand %p874_p1, %p868_p4 }
  0x68   : > { %v385_v42 = vsel %vm324_vm2, %v383_v38, -inf  ;;  %v1221_v43 = vmax.f32 %v329_v35, %v330_v39  ;;  %v392_v45 = vsel %vm324_vm2, %v384_v40, -inf }
  0x69   : > { %v386_v44 = vrot.slane %v385_v42, 4  ;;  %v1225_v47 = vmax.f32 %v336_v37, %v337_v41  ;;  %v393_v48 = vrot.slane %v392_v45, 4  ;;  %v501_v52 = vrot.slane %v494_v46, %v1202_v32 }
  0x6a   : > { %v339_v50 = vsub.f32 %v1188_v6, %v1221_v43 }
  0x6b   : > { %v387_v51 = vmax.f32 %v385_v42, %v386_v44  ;;  %v340_v53 = vsub.f32 %v1192_v10, %v1225_v47  ;;  %v394_v54 = vmax.f32 %v392_v45, %v393_v48  ;;  %v503_v56 = vadd.f32 %v501_v52, %v484_v49 }
  0x6c   : > { %v341_v58 = vmul.f32 1.442695, %v339_v50 }
  0x6d   : > { %v388_v55 = vrot.slane %v387_v51, 2  ;;  %v395_v57 = vrot.slane %v394_v54, 2  ;;  %504 = vst.msk [vmem:[%s1183_s6] sm:$0x3] %vm1174_vm0, %v503_v56  ;;  %v343_v60 = vmul.f32 1.442695, %v340_v53 }
  0x6f   : > { %v389_v59 = vmax.f32 %v387_v51, %v388_v55  ;;  %v396_v61 = vmax.f32 %v394_v54, %v395_v57 }
  0x70   : > { %878 = shalt.err (!%p875_p2)
}
  0x71   : > { %s879_s30 = scalar_lea.hbm %s1240_s28, 32  ;;  %s883_s22 = scalar_lea.hbm %s1363_s3, 64 }
  0x72   : > { %p880_p9 = scmp.ne.s32.totalorder %s1240_s28, %s879_s30  ;;  %p884_p6 = scmp.lt.u32.totalorder %s1240_s28, %s1363_s3 }
  0x73   : > { %p885_p13 = scmp.lt.u32.totalorder %s883_s22, %s879_s30  ;;  %p887_p8 = scmp.lt.u32.totalorder %s879_s30, %s1240_s28 }
  0x74   : > { %p881_p11 = pnand %p880_p9, %p1382_p0 }
  0x75   : > { %p886_p5 = por %p885_p13, %p884_p6 }
  0x76   : > { %p882_p3 = pneg %p881_p11 }
  0x77   : > { %p888_p7 = por %p887_p8, %p886_p5 }
  0x79   : > { %p889_p4 = pnand %p888_p7, %p882_p3 }
  0x7b   : > { %892 = shalt.err (!%p889_p4)
}
  0x7c   : > { %714 = dma.vmem_to_hbm [thread:$0]  (%p1382_p0), %s1242_s4, 32, %s1240_s28, %s511_s11   ;;  %v390_v62 = vrot.slane %v389_v59, 1  ;;  %v397_v63 = vrot.slane %v396_v61, 1  ;;  %785 = vpow2.f32 %v341_v58  ;;  %v365_v42 = vsel %vm1204_vm5, %v1188_v6, 0.0 }
  0x7d   : > { %787 = vpow2.f32 %v343_v60  ;;  %v366_v45 = vsel %vm1208_vm6, %v1192_v10, 0.0  ;;  %v367_v48 = vsel %vm324_vm2, %v365_v42, 0.0  ;;  %s525_s4 = sshll.u32 %s1178_s29, 4  ;;  %s1308_s11 = scalar_lea.hbm %s1362_s2, %s707_s24  ;;  %s1310_s4 = int_to_ptr.vmem [resolvable:$true] %s525_s4 }
  0x7e   : > { %v391_v0 = vmax.f32 %v389_v59, %v390_v62  ;;  %v398_v2 = vmax.f32 %v396_v61, %v397_v63  ;;  %v374_v49 = vsel %vm324_vm2, %v366_v45, 0.0  ;;  %v368_v52 = vrot.slane %v367_v48, 4  ;;  %s506_s19 = scalar_lea.sflag [#allocation4], %s1160_s23  ;;  %s893_s21 = scalar_lea.vmem %s1310_s4, 32 }
  0x7f   : > { %v375_v53 = vrot.slane %v374_v49, 4  ;;  %p894_p10 = scmp.ne.s32.totalorder %s1310_s4, %s893_s21  ;;  %s991_s15 = smov [#allocation7]  }
  0x80   : > { %v1269_v3 = vsub.f32 %v383_v38, %v391_v0  ;;  %v1271_v4 = vsub.f32 %v384_v40, %v398_v2  ;;  %v369_v55 = vadd.f32 %v368_v52, %v367_v48  ;;  %s897_s8 = sshll.u32 %s991_s15, 4  ;;  %s898_s8 = int_to_ptr.vmem [resolvable:$false] %s897_s8 }
  0x81   : > { %v376_v58 = vadd.f32 %v375_v53, %v374_v49  ;;  %p895_p12 = pnand %p894_p10, %p1382_p0  ;;  %s899_s10 = scalar_lea.vmem %s898_s8, 64 }
  0x82   : > { %v401_v5 = vmul.f32 1.442695, %v1269_v3  ;;  %v403_v7 = vmul.f32 1.442695, %v1271_v4  ;;  %v370_v0 = vrot.slane %v369_v55, 2  ;;  %p900_p2 = scmp.lt.s32.totalorder %s1310_s4, %s898_s8  ;;  %p901_p9 = scmp.lt.s32.totalorder %s899_s10, %s893_s21 }
  0x83   : > { %p896_p1 = pneg %p895_p12 }
  0x84   : > { %789 = vpow2.f32 %v401_v5  ;;  %v377_v5 = vrot.slane %v376_v58, 2  ;;  %p902_p11 = por %p901_p9, %p900_p2 }
  0x85   : > { %791 = vpow2.f32 %v403_v7 }
  0x86   : > { %v786_v8 = vpop.eup %785  ;;  %p903_p3 = pnand %p902_p11, %p896_p1 }
  0x87   : > { %v788_v9 = vpop.eup %787  ;;  %v345_v11 = vsel %vm324_vm2, %v786_v8, 0.0 }
  0x88   : > { %v352_v12 = vsel %vm324_vm2, %v788_v9, 0.0  ;;  %v346_v14 = vrot.slane %v345_v11, 4 }
  0x89   : > { %v353_v16 = vrot.slane %v352_v12, 4 }
  0x8a   : > { %v347_v21 = vadd.f32 %v346_v14, %v345_v11  ;;  %v371_v11 = vadd.f32 %v370_v0, %v369_v55 }
  0x8b   : > { %v354_v23 = vadd.f32 %v353_v16, %v352_v12 }
  0x8c   : > { %v348_v27 = vrot.slane %v347_v21, 2 }
  0x8d   : > { %v355_v29 = vrot.slane %v354_v23, 2 }
  0x8e   : > { %v790_v13 = vpop.eup %789  ;;  %v349_v38 = vadd.f32 %v348_v27, %v347_v21 }
  0x8f   : > { %v792_v15 = vpop.eup %791  ;;  %v405_v17 = vsel %vm324_vm2, %v790_v13, 0.0  ;;  %v356_v40 = vadd.f32 %v355_v29, %v354_v23 }
  0x90   : > { %v406_v18 = vrot.slane %v405_v17, 4  ;;  %v412_v19 = vsel %vm324_vm2, %v792_v15, 0.0  ;;  %v350_v44 = vrot.slane %v349_v38, 1 }
  0x91   : > { %v413_v20 = vrot.slane %v412_v19, 4  ;;  %v357_v46 = vrot.slane %v356_v40, 1 }
  0x92   : > { %v407_v22 = vadd.f32 %v406_v18, %v405_v17  ;;  %v351_v50 = vadd.f32 %v350_v44, %v349_v38 }
  0x93   : > { %v414_v24 = vadd.f32 %v413_v20, %v412_v19  ;;  %v358_v51 = vadd.f32 %v357_v46, %v356_v40  ;;  %v372_v20 = vrot.slane %v371_v11, 1 }
  0x94   : > { %v408_v25 = vrot.slane %v407_v22, 2 }
  0x95   : > { %v415_v26 = vrot.slane %v414_v24, 2 }
  0x96   : > { %v409_v28 = vadd.f32 %v408_v25, %v407_v22 }
  0x97   : > { %v416_v35 = vadd.f32 %v415_v26, %v414_v24 }
  0x98   : > { %v410_v36 = vrot.slane %v409_v28, 1 }
  0x99   : > { %v417_v37 = vrot.slane %v416_v35, 1 }
  0x9a   : > { %v411_v39 = vadd.f32 %v410_v36, %v409_v28  ;;  %v373_v28 = vadd.f32 %v372_v20, %v371_v11 }
  0x9b   : > { %v418_v41 = vadd.f32 %v417_v37, %v416_v35 }
  0x9c   : > { %793 = vrcp.f32 %v411_v39 }
  0x9d   : > { %795 = vrcp.f32 %v418_v41 }
  0x9e   : > { %797 = vlog2.f32 %v411_v39 }
  0x9f   : > { %799 = vlog2.f32 %v418_v41 }
  0xa0   : > { %801 = vlog2.f32 %v351_v50  ;;  %v455_v50 = vld [vmem:[%s1178_s29] sm:$0x3] }
  0xa1   : > { %803 = vlog2.f32 %v358_v51 }
  0xa6   : > { %v794_v54 = vpop.eup %793 }
  0xa7   : > { %v796_v6 = vpop.eup %795  ;;  %v421_v56 = vmul.f32 %v794_v54, %v790_v13  ;;  %v378_v13 = vadd.f32 %v377_v5, %v376_v58 }
  0xa8   : > { %v798_v57 = vpop.eup %797  ;;  %v422_v10 = vmul.f32 %v796_v6, %v792_v15 }
  0xa9   : > { %v800_v59 = vpop.eup %799  ;;  %v424_v60 = vmul.f32 0.6931472, %v798_v57  ;;  %v693_v61 = vadd.f32 -0.33333334, %v421_v56  ;;  %v379_v23 = vrot.slane %v378_v13, 1 }
  0xaa   : > { %v426_v62 = vmul.f32 0.6931472, %v800_v59  ;;  %v694_v63 = vadd.f32 -0.33333334, %v422_v10  ;;  %v802_v14 = vpop.eup %801 }
  0xab   : > { %v427_v2 = vsub.f32 %v1269_v3, %v424_v60  ;;  %v804_v17 = vpop.eup %803  ;;  %v360_v3 = vmul.f32 0.6931472, %v802_v14  ;;  %v380_v34 = vadd.f32 %v379_v23, %v378_v13 }
  0xac   : > { %v428_v7 = vsub.f32 %v1271_v4, %v426_v62  ;;  %v362_v22 = vmul.f32 0.6931472, %v804_v17 }
  0xad   : > { %v431_v8 = vmul.f32 %v693_v61, %v427_v2  ;;  %v363_v27 = vadd.f32 %v360_v3, %v1221_v43 }
  0xae   : > { %v432_v9 = vmul.f32 %v694_v63, %v428_v7  ;;  %v364_v29 = vadd.f32 %v362_v22, %v1225_v47 }
  0xaf   : > { %v433_v12 = vmul.f32 0.15, %v431_v8  ;;  %v381_v38 = vsub.f32 %v363_v27, %v373_v28 }
  0xb0   : > { %v434_v16 = vmul.f32 0.15, %v432_v9  ;;  %v382_v40 = vsub.f32 %v364_v29, %v380_v34 }
  0xb1   : > { %v435_v15 = vsel %vm1204_vm5, 0.0, %v433_v12 }
  0xb2   : > { %v436_v18 = vsel %vm1208_vm6, 0.0, %v434_v16  ;;  %v437_v19 = vsel %vm324_vm2, %v435_v15, 0.0 }
  0xb3   : > { %v438_v21 = vrot.slane %v437_v19, 4  ;;  %v444_v4 = vsel %vm324_vm2, %v436_v18, 0.0 }
  0xb4   : > { %v445_v24 = vrot.slane %v444_v4, 4 }
  0xb5   : > { %v439_v25 = vadd.f32 %v438_v21, %v437_v19 }
  0xb6   : > { %v446_v26 = vadd.f32 %v445_v24, %v444_v4 }
  0xb7   : > { %v440_v33 = vrot.slane %v439_v25, 2 }
  0xb8   : > { %v447_v35 = vrot.slane %v446_v26, 2 }
  0xb9   : > { %v441_v36 = vadd.f32 %v440_v33, %v439_v25 }
  0xba   : > { %v448_v37 = vadd.f32 %v447_v35, %v446_v26 }
  0xbb   : > { %v442_v39 = vrot.slane %v441_v36, 1 }
  0xbc   : > { %v449_v41 = vrot.slane %v448_v37, 1 }
  0xbd   : > { %v443_v42 = vadd.f32 %v442_v39, %v441_v36 }
  0xbe   : > { %v450_v44 = vadd.f32 %v449_v41, %v448_v37 }
  0xbf   : > { %v456_v43 = vadd.f32 %v443_v42, %v381_v38 }
  0xc0   : > { %v457_v45 = vadd.f32 %v450_v44, %v382_v40 }
  0xc1   : > { %v458_v47 = vmul.f32 %v1198_v30, %v456_v43 }
  0xc2   : > { %v459_v46 = vmul.f32 %v1200_v31, %v457_v45 }
  0xc4   : > { %v462_v48 = vcombine.low %v458_v47, %v459_v46 }
  0xc6   : > { %v469_v49 = vrot.slane %v462_v48, %v1202_v32 }
  0xc8   : > { %v476_v51 = vrot.slane %v469_v49, %v1202_v32 }
  0xca   : > { %v478_v52 = vadd.f32 %v476_v51, %v455_v50 }
  0xcc   : > { %483 = vst.msk [vmem:[%s1178_s29] sm:$0x3] %vm1174_vm0, %v478_v52 }
  0xcd   : > { %906 = shalt.err (!%p903_p3)
}
  0xce   : > { %s907_s23 = scalar_lea.hbm %s1308_s11, 32  ;;  %s911_s30 = scalar_lea.hbm %s1362_s2, 64 }
  0xcf   : > { %p908_p6 = scmp.ne.s32.totalorder %s1308_s11, %s907_s23  ;;  %p912_p8 = scmp.lt.u32.totalorder %s1308_s11, %s1362_s2 }
  0xd0   : > { %p913_p7 = scmp.lt.u32.totalorder %s911_s30, %s907_s23  ;;  %p915_p10 = scmp.lt.u32.totalorder %s907_s23, %s1308_s11 }
  0xd1   : > { %p909_p13 = pnand %p908_p6, %p1382_p0 }
  0xd2   : > { %p914_p4 = por %p913_p7, %p912_p8 }
  0xd3   : > { %p910_p5 = pneg %p909_p13 }
  0xd4   : > { %p916_p12 = por %p915_p10, %p914_p4 }
  0xd6   : > { %p917_p1 = pnand %p916_p12, %p910_p5 }
  0xd8   : > { %920 = shalt.err (!%p917_p1)
}
  0xd9   : > { %713 = dma.vmem_to_hbm [thread:$0]  (%p1382_p0), %s1310_s4, 32, %s1308_s11, %s506_s19  }
  0xda PF: > { %s551_s22 = sand.u32 1, %s963_s12   ;;  %p1383_p2 = scmp.ne.s32.totalorder %s1369_s27, 0 }
  0xdb   : > { %p1384_p9 = scmp.ge.s32.totalorder %s983_s17, 2  ;;  %s552_s6 = scalar_lea.sflag [#allocation4], %s551_s22 }
  0xdd   : > { %p725_p11 = pnand %p1384_p9, %p1383_p2 }
  0xdf   : > { %954 = dma.done.wait (!%p725_p11), %s552_s6, 32  }
  0xe0   : > { %956 = vsyncadd (!%p725_p11), %s552_s6, 4294967264  ;;  %s561_s5 = scalar_lea.sflag [#allocation9], %s551_s22 }
  0xe1   : > { %958 = dma.done.wait (!%p725_p11), %s561_s5, 32  }
  0xe2   : > { %960 = vsyncadd (!%p725_p11), %s561_s5, 4294967264  ;;  %s26_s17 = sadd.s32 1, %s983_s17   ;;  %s1385_s12 = smov %s967_s13 }
  0xe3   : > { %p23_p3 = scmp.ge.s32.totalorder %s26_s17, 4   ;;  %s1386_s13 = smov %s971_s14 }
  0xe4   : > { %s1387_s14 = smov %s1068_s26  ;;  %s1388_s15 = smov %s979_s16 }
  0xe5   : > { %s1389_s16 = smov %s1391_s20  ;;  %25 = sbr.rel (!%p23_p3) target bundleno = 10 (0xa), region = 107 }
  0xec   :  { %566 = vsyncpa [#allocation3], 1 }
  0xed   :  { %568 = vsyncpa [#allocation3 + $0x1], 1 }
  0xee   :  { %569 = vsyncpa [#allocation6], 1 }
  0xef   :  { %571 = vsyncpa [#allocation6 + $0x1], 1 }
  0xf0   :  { %572 = vsyncpa [#allocation4], 1 }
  0xf1   :  { %574 = vsyncpa [#allocation4 + $0x1], 1 }
  0xf2   :  { %575 = vsyncpa [#allocation9], 1 }
  0xf3   :  { %577 = vsyncpa [#allocation9 + $0x1], 1 }

</bundles_post_ra>
